<compile_context>
chip_gen: v7x
topology: tpu7x:2x2x1
jax: 0.10.0
libtpu: 0.0.40
codegen_flags: <defaults>
</compile_context>

<pallas_src>
import jax
import jax.numpy as jnp
from jax.experimental import pallas as pl
from jax.experimental.pallas import tpu as pltpu


# ----------------------------------------------------------------------------
# Kernel: fused channel attention for a (TB, C, HW) slab of images.
# ----------------------------------------------------------------------------
def _channel_attention_kernel(x_ref, w1t_ref, w2t_ref, out_ref):
    """y = x * sigmoid(relu(gap(x) @ W1t) @ W2t)  for TB images at once.

    x_ref  : (TB, C, HW)  activations; spatial on lanes, channels on sublanes
    w1t_ref: (C, Cr)      = W1.T * (1/HW)   (1/HW folded in by the wrapper)
    w2t_ref: (Cr, C)      = W2.T
    out_ref: (TB, C, HW)
    """
    x = x_ref[...]                                              # (TB, C, HW)

    # Global average pool: lane-axis reduction only (1/HW lives in w1t).
    gap = jnp.sum(x.astype(jnp.float32), axis=-1)               # (TB, C) f32

    # Squeeze: fc1 + ReLU.
    h = jnp.dot(gap, w1t_ref[...], preferred_element_type=jnp.float32)
    h = jnp.maximum(h, 0.0)                                     # (TB, Cr)

    # Excite: fc2 + sigmoid (EUP transcendental).
    s = jnp.dot(h, w2t_ref[...], preferred_element_type=jnp.float32)
    scale = jax.nn.sigmoid(s)                                   # (TB, C)

    # Per-(image, channel) rescale, broadcast along the lane (spatial) axis.
    out_ref[...] = (x.astype(jnp.float32) * scale[:, :, None]).astype(
        out_ref.dtype)


# ----------------------------------------------------------------------------
# Wrapper
# ----------------------------------------------------------------------------
def channel_attention(x_nchw, w1, w2, *, block_batch=None):
    """PyTorch-layout forward of ChannelAttentionLayer.

    x_nchw: (N, C, H, W)  activations
    w1    : (Cr, C)       conv_fc[0].weight[:, :, 0, 0]  (no bias)
    w2    : (C, Cr)       conv_fc[2].weight[:, :, 0, 0]  (no bias)
    """
    N, C, H, W = x_nchw.shape
    HW = H * W
    Cr = w1.shape[0]
    itemsize = jnp.dtype(x_nchw.dtype).itemsize

    # --- pick the batch tile: ~1 MiB of input per block, but keep >= 2 grid
    #     steps whenever possible so both v7x TensorCores get work. ---
    if block_batch is None:
        bytes_per_img = C * HW * itemsize
        target_bytes = 1 << 20
        tb = max(1, min(N, target_bytes // max(bytes_per_img, 1)))
        if N > 1 and pl.cdiv(N, tb) < 2:
            tb = pl.cdiv(N, 2)
    else:
        tb = min(block_batch, N)
    num_blocks = pl.cdiv(N, tb)
    n_pad = num_blocks * tb

    # (N, C, H, W) -> (N, C, H*W): free, contiguous reshape; spatial on lanes.
    x2d = x_nchw.reshape(N, C, HW)
    if n_pad != N:
        # Zero padding is safe: padded rows only affect padded outputs,
        # which are sliced away below.
        x2d = jnp.pad(x2d, ((0, n_pad - N), (0, 0), (0, 0)))

    # Fold 1/HW into fc1; pre-transpose both weights once (outside the kernel).
    w1t = jnp.transpose(w1) * (1.0 / HW)          # (C, Cr)
    w2t = jnp.transpose(w2)                       # (Cr, C)

    # VMEM budget: double-buffered input + output blocks, plus headroom.
    block_bytes = tb * C * HW * itemsize
    vmem_limit = int(min(100 << 20, max(32 << 20, 6 * block_bytes)))

    out = pl.pallas_call(
        _channel_attention_kernel,
        out_shape=jax.ShapeDtypeStruct((n_pad, C, HW), x_nchw.dtype),
        grid=(num_blocks,),
        in_specs=[
            pl.BlockSpec((tb, C, HW), lambda n: (n, 0, 0)),
            pl.BlockSpec((C, Cr), lambda n: (0, 0)),
            pl.BlockSpec((Cr, C), lambda n: (0, 0)),
        ],
        out_specs=pl.BlockSpec((tb, C, HW), lambda n: (n, 0, 0)),
        compiler_params=pltpu.CompilerParams(
            dimension_semantics=("parallel",),
            vmem_limit_bytes=vmem_limit),
    )(x2d, w1t, w2t)

    return out[:N].reshape(N, C, H, W)


# ----------------------------------------------------------------------------
if __name__ == "__main__":
    N, C, H, W = 5, 16, 16, 16          # N=5 exercises the padded tail path
    reduction = 4
    Cr = C // reduction                 # 4

    key = jax.random.PRNGKey(0)
    kx, k1, k2 = jax.random.split(key, 3)
    x = jax.random.normal(kx, (N, C, H, W), jnp.float32)      # PyTorch NCHW
    w1 = jax.random.normal(k1, (Cr, C), jnp.float32) * 0.2    # 1x1 conv C->Cr
    w2 = jax.random.normal(k2, (C, Cr), jnp.float32) * 0.2    # 1x1 conv Cr->C

    out = jax.jit(channel_attention)(x, w1, w2)
    jax.block_until_ready(out)

    # Pure-JAX reference of the PyTorch forward (adaptive avg pool -> 1x1 conv
    # -> relu -> 1x1 conv -> sigmoid -> scale).
    gap = jnp.mean(x, axis=(2, 3))                            # (N, C)
    h = jnp.maximum(gap @ w1.T, 0.0)                          # (N, Cr)
    s = jax.nn.sigmoid(h @ w2.T)                              # (N, C)
    ref = x * s[:, :, None, None]

    assert out.shape == (N, C, H, W)
    assert jnp.allclose(out, ref, rtol=1e-5, atol=1e-5), float(
        jnp.max(jnp.abs(out - ref)))
    print("KERNEL_OK")
</pallas_src>

<mosaic_0001>
module attributes {stable_mosaic.version = 11 : i64} {
  func.func @_channel_attention_kernel(%arg0: i32, %arg1: memref<3x16x256xf32, #tpu.memory_space<vmem>>, %arg2: memref<16x4xf32, #tpu.memory_space<vmem>>, %arg3: memref<4x16xf32, #tpu.memory_space<vmem>>, %arg4: memref<3x16x256xf32, #tpu.memory_space<vmem>>) attributes {dimension_semantics = [#tpu.dimension_semantics<parallel>], iteration_bounds = array<i64: 2>, scalar_prefetch = 0 : i64, scratch_operands = 0 : i64, tpu.core_type = #tpu.core_type<tc>, window_params = [{transform_indices = @transform_0, window_bounds = array<i64: 3, 16, 256>}, {pipeline_mode = #tpu.pipeline_mode<synchronous>, transform_indices = @transform_1, window_bounds = array<i64: 16, 4>}, {pipeline_mode = #tpu.pipeline_mode<synchronous>, transform_indices = @transform_2, window_bounds = array<i64: 4, 16>}, {transform_indices = @transform_3, window_bounds = array<i64: 3, 16, 256>}]} {
    %c0 = arith.constant 0 : index
    %c0_0 = arith.constant 0 : index
    %c0_1 = arith.constant 0 : index
    %0 = vector.load %arg1[%c0, %c0_0, %c0_1] : memref<3x16x256xf32, #tpu.memory_space<vmem>>, vector<3x16x256xf32>
    %cst = arith.constant dense<0.000000e+00> : vector<3x16xf32>
    %1 = vector.multi_reduction <add>, %0, %cst [2] : vector<3x16x256xf32> to vector<3x16xf32>
    %c0_2 = arith.constant 0 : index
    %c0_3 = arith.constant 0 : index
    %2 = vector.load %arg2[%c0_2, %c0_3] : memref<16x4xf32, #tpu.memory_space<vmem>>, vector<16x4xf32>
    %cst_4 = arith.constant dense<0.000000e+00> : vector<3x4xf32>
    %3 = tpu.matmul %1, %2, %cst_4 {dimension_numbers = #tpu.dot_dimension_numbers<[1], [0], [0], [1], [0, 0, 1, 1], [], []>} : vector<3x16xf32>, vector<16x4xf32>, vector<3x4xf32> -> vector<3x4xf32>
    %cst_5 = arith.constant 0.000000e+00 : f32
    %4 = vector.broadcast %cst_5 : f32 to vector<3x4xf32>
    %5 = arith.maximumf %3, %4 : vector<3x4xf32>
    %c0_6 = arith.constant 0 : index
    %c0_7 = arith.constant 0 : index
    %6 = vector.load %arg3[%c0_6, %c0_7] : memref<4x16xf32, #tpu.memory_space<vmem>>, vector<4x16xf32>
    %cst_8 = arith.constant dense<0.000000e+00> : vector<3x16xf32>
    %7 = tpu.matmul %5, %6, %cst_8 {dimension_numbers = #tpu.dot_dimension_numbers<[1], [0], [0], [1], [0, 0, 1, 1], [], []>} : vector<3x4xf32>, vector<4x16xf32>, vector<3x16xf32> -> vector<3x16xf32>
    %8 = arith.negf %7 : vector<3x16xf32>
    %9 = math.exp %8 : vector<3x16xf32>
    %cst_9 = arith.constant 1.000000e+00 : f32
    %10 = vector.broadcast %cst_9 : f32 to vector<3x16xf32>
    %11 = arith.addf %10, %9 : vector<3x16xf32>
    %12 = arith.divf %10, %11 : vector<3x16xf32>
    %13 = vector.shape_cast %12 : vector<3x16xf32> to vector<3x16x1xf32>
    %14 = vector.broadcast %13 : vector<3x16x1xf32> to vector<3x16x256xf32>
    %15 = arith.mulf %0, %14 : vector<3x16x256xf32>
    %c0_10 = arith.constant 0 : index
    %c0_11 = arith.constant 0 : index
    %c0_12 = arith.constant 0 : index
    %16 = vector.load %arg4[%c0_10, %c0_11, %c0_12] : memref<3x16x256xf32, #tpu.memory_space<vmem>>, vector<3x16x256xf32>
    tpu.vector_store %arg4[%c0_10, %c0_11, %c0_12], %15 {strides = array<i32>} : memref<3x16x256xf32, #tpu.memory_space<vmem>>, vector<3x16x256xf32>,
    return
  }
  func.func @transform_0(%arg0: i32) -> (i32, i32, i32) {
    %c0_i32 = arith.constant 0 : i32
    %c0_i32_0 = arith.constant 0 : i32
    %c0_i32_1 = arith.constant 0 : i32
    return %arg0, %c0_i32, %c0_i32_0 : i32, i32, i32
  }
  func.func @transform_1(%arg0: i32) -> (i32, i32) {
    %c0_i32 = arith.constant 0 : i32
    %c0_i32_0 = arith.constant 0 : i32
    %c0_i32_1 = arith.constant 0 : i32
    return %c0_i32, %c0_i32_0 : i32, i32
  }
  func.func @transform_2(%arg0: i32) -> (i32, i32) {
    %c0_i32 = arith.constant 0 : i32
    %c0_i32_0 = arith.constant 0 : i32
    %c0_i32_1 = arith.constant 0 : i32
    return %c0_i32, %c0_i32_0 : i32, i32
  }
  func.func @transform_3(%arg0: i32) -> (i32, i32, i32) {
    %c0_i32 = arith.constant 0 : i32
    %c0_i32_0 = arith.constant 0 : i32
    %c0_i32_1 = arith.constant 0 : i32
    return %arg0, %c0_i32, %c0_i32_0 : i32, i32, i32
  }
}

</mosaic_0001>

<bundles_post_ra>
// kernel: channel_attention.1
= control target key start
LH: loop header
LB: loop body
LE: loop exit
PB: predicated region body
PF: predicated region fallthrough
CT: control target
= control target key end

     0   :  { %s609_s12 = smov 0   ;;  %s690_s0 = inlined_call_operand.vmem [shape: f32[6,16,256], index: 0, kind: input, shape index: {}]   ;;  %s691_s1 = inlined_call_operand.vmem [shape: f32[16,4], index: 1, kind: input, shape index: {}]   ;;  %s692_s2 = inlined_call_operand.vmem [shape: f32[4,16], index: 2, kind: input, shape index: {}]   ;;  %s693_s3 = inlined_call_operand.vmem [shape: f32[6,16,256], index: 3, kind: output, shape index: {}]  }
   0x1 LB: > { %s526_s13 = sadd.s32 4294967295, %s584_s12   ;;  %p530_p0 = scmp.ge.s32.totalorder %s584_s12, 1  ;;  %s584_s12 = sphi %s609_s12, %s13_s12  }
   0x2   : > { %p139_p1 = scmp.lt.s32.totalorder %s584_s12, 3 }
   0x4   : > { %p140_p2 = pnand %p530_p0, %p139_p1 }
   0x5   : > { %s165_s14 = smul.u32 (!%p140_p2), 3, %s526_s13  ;;  %v209_v18 = vld [vmem:[%s691_s1] sm:$0xff] (!%p140_p2)  ;;  %v210_v19 = vld [vmem:[%s691_s1 + $0x8] sm:$0xff] (!%p140_p2)  ;;  %v586_v21 = vmov (!%p140_p2), 0.0|0.0   ;;  %vm587_vm0 = vmmov (!%p140_p2), 0   ;;  %v588_v22 = vmov (!%p140_p2), 0.0   ;;  %v217_v23 = vlaneseq (!%p140_p2) }
   0x6   : > { %143 = sbr.rel (%p140_p2) target bundleno = 758 (0x2f6), region = 32  ;;  %v561_v20 = vpack.c.bf16 (!%p140_p2), %v210_v19, %v209_v18  ;;  %560 = vmatprep.subr.bf16.mxu0 (!%p140_p2), %v586_v21  ;;  %552 = vmatprep.mubr.msk.f32.mxu0 (!%p140_p2), %vm587_vm0, %v588_v22  ;;  %vm228_vm1 = vcmask (!%p140_p2), 130112   ;;  %vm248_vm2 = vcmask (!%p140_p2), 1041409   ;;  %vm250_vm3 = vcmask (!%p140_p2), 1042434   ;;  %v326_v46 = vld [vmem:[%s692_s2] sm:$0xf] (!%p140_p2) }
   0x7   : > { %p166_p3 = scmp.lt.s32.totalorder (!%p140_p2), %s165_s14, 5  ;;  %555 = vmatprep.subr.mxu1 (!%p140_p2), %v588_v22  ;;  %557 = vmatprep.mubr.msk.f32.mxu1 (!%p140_p2), %vm587_vm0, %v588_v22  ;;  %v218_v24 = vand.u32 (!%p140_p2), 127, %v217_v23  ;;  %v220_v26 = vshrl.u32 (!%p140_p2), %v217_v23, 7  ;;  %vm252_vm4 = vcmask (!%p140_p2), 130048   ;;  %vm331_vm5 = vcmask (!%p140_p2), 1043456  }
   0x8   : > { %562 = vmatpush3.bf16.msra.mxu0 (!%p140_p2), %v561_v20  ;;  %556 = vmatpush3.msk.msra.mxu1 (!%p140_p2), %vm331_vm5, %v326_v46  ;;  %vm327_vm6 = vcmask (!%p140_p2), 31744  }
   0x9   : > { %v223_v25 = vadd.s32 (!%p140_p2), 4294967288, %v218_v24  ;;  %v221_v30 = vsub.s32 (!%p140_p2), %v218_v24, %v220_v26  ;;  %v413_v55 = vsub.s32 (!%p140_p2), 0, %v220_v26  ;;  %v424_v58 = vsub.s32 (!%p140_p2), 1, %v220_v26 }
   0xa   : > { %v435_v59 = vsub.s32 (!%p140_p2), 2, %v220_v26 }
   0xb   : > { %v226_v29 = vsub.s32 (!%p140_p2), %v223_v25, %v220_v26 }
   0xd   : > { %s695_s14 = smov (!%p166_p3, %s165_s14), 5 }
   0xe   : > { %s541_s15 = sshll.u32 %s695_s14, 5 }
   0xf   : > { %s170_s18 = scalar_lea.vmem %s690_s0, %s541_s15  ;;  %s177_s27 = scalar_lea.vmem %s693_s3, %s541_s15 }
  0x10   : > { %v625_v0 = vld [vmem:[%s170_s18 + $0x20] sm:$0xff]  ;;  %v627_v1 = vld [vmem:[%s170_s18 + $0x28] sm:$0xff]  ;;  %v635_v5 = vld [vmem:[%s170_s18 + $0x30] sm:$0xff] }
  0x11   : > { %v629_v2 = vld [vmem:[%s170_s18] sm:$0xff]  ;;  %v197_v3 = vadd.f32 %v627_v1, %v625_v0  ;;  %v633_v4 = vld [vmem:[%s170_s18 + $0x8] sm:$0xff]  ;;  %v637_v6 = vld [vmem:[%s170_s18 + $0x38] sm:$0xff] }
  0x12   : > { %v191_v7 = vadd.f32 %v633_v4, %v629_v2  ;;  %v641_v8 = vld [vmem:[%s170_s18 + $0x10] sm:$0xff]  ;;  %v643_v9 = vld [vmem:[%s170_s18 + $0x18] sm:$0xff]  ;;  %v200_v10 = vadd.f32 %v637_v6, %v635_v5  ;;  %v653_v14 = vld [vmem:[%s170_s18 + $0x40] sm:$0xff] }
  0x13   : > { %198 = vadd.xlane.f32.xlu1 %v197_v3  ;;  %v194_v11 = vadd.f32 %v643_v9, %v641_v8  ;;  %v649_v12 = vld [vmem:[%s170_s18 + $0x50] sm:$0xff]  ;;  %v651_v13 = vld [vmem:[%s170_s18 + $0x58] sm:$0xff]  ;;  %v655_v15 = vld [vmem:[%s170_s18 + $0x48] sm:$0xff] }
  0x14   : > { %192 = vadd.xlane.f32.xlu0 %v191_v7  ;;  %v206_v16 = vadd.f32 %v651_v13, %v649_v12  ;;  %v203_v17 = vadd.f32 %v655_v15, %v653_v14 }
  0x17   : > { %201 = vadd.xlane.f32.xlu1 %v200_v10 }
  0x18   : > { %195 = vadd.xlane.f32.xlu0 %v194_v11 }
  0x1b   : > { %207 = vadd.xlane.f32.xlu1 %v206_v16 }
  0x1c   : > { %204 = vadd.xlane.f32.xlu0 %v203_v17 }
  0xa0   : > { %v199_v27 = vpop.xlane.xlu1 %198 }
  0xa1   : > { %v193_v28 = vpop.xlane.xlu0 %192  ;;  %v233_v35 = vrot.slane %v199_v27, %v221_v30 }
  0xa2   : > { %v222_v36 = vrot.slane %v193_v28, %v221_v30 }
  0xa4   : > { %v202_v31 = vpop.xlane.xlu1 %201 }
  0xa5   : > { %v237_v32 = vrot.slane %v202_v31, %v226_v29  ;;  %v196_v33 = vpop.xlane.xlu0 %195 }
  0xa6   : > { %v227_v34 = vrot.slane %v196_v33, %v226_v29 }
  0xa7   : > { %v238_v38 = vsel %vm228_vm1, %v237_v32, %v233_v35 }
  0xa8   : > { %v208_v37 = vpop.xlane.xlu1 %207  ;;  %v229_v39 = vsel %vm228_vm1, %v227_v34, %v222_v36 }
  0xa9   : > { %v246_v40 = vrot.slane %v208_v37, %v226_v29  ;;  %v205_v41 = vpop.xlane.xlu0 %204  ;;  %v249_v44 = vsel %vm248_vm2, %v238_v38, %v229_v39 }
  0xaa   : > { %v242_v42 = vrot.slane %v205_v41, %v221_v30 }
  0xac   : > { %v247_v43 = vsel %vm228_vm1, %v246_v40, %v242_v42 }
  0xad   : > { %v251_v45 = vsel %vm250_vm3, %v247_v43, %v249_v44 }
  0xae   : > { %553 = vmatmul.mubr.msk.f32.vlgmr.msra.gmra.mrb[0].mxu0 %vm252_vm4, %v251_v45 }
 0x181   : > { %v321_v47 = vpop.f32.mrb[0].mxu0 }
 0x182   : > { %v325_v48 = vmax.f32 %v321_v47, 0.0  ;;  %v554_v49 = vpop.f32.mrb[1].mxu0 }
 0x184   : > { %558 = vmatmul.mubr.msk.f32.vlgmr.msra.gmra.mrb[0].mxu1 %vm327_vm6, %v325_v48 }
 0x257   : > { %v401_v50 = vpop.f32.mrb[0].mxu1 }
 0x258   : > { %v538_v51 = vmul.f32 -1.442695, %v401_v50  ;;  %v559_v52 = vpop.f32.mrb[1].mxu1 }
 0x25a   : > { %574 = vpow2.f32 %v538_v51 }
 0x264   : > { %v575_v53 = vpop.eup %574 }
 0x265   : > { %v408_v54 = vadd.f32 1.0, %v575_v53 }
 0x267   : > { %576 = vrcp.f32 %v408_v54 }
 0x271   : > { %v577_v56 = vpop.eup %576 }
 0x272   : > { %v414_v57 = vrot.slane %v577_v56, %v413_v55  ;;  %v425_v60 = vrot.slane %v577_v56, %v424_v58  ;;  %v436_v61 = vrot.slane %v577_v56, %v435_v59 }
 0x274   : > { %420 = vbcast.lane.b32.xlu1 %v414_v57, 264  ;;  %416 = vbcast.lane.b32.xlu0 %v414_v57, 256 }
 0x278   : > { %427 = vbcast.lane.b32.xlu1 %v425_v60, 256  ;;  %438 = vbcast.lane.b32.xlu0 %v436_v61, 256 }
 0x27c   : > { %431 = vbcast.lane.b32.xlu1 %v425_v60, 264 }
 0x280   : > { %442 = vbcast.lane.b32.xlu1 %v436_v61, 264 }
 0x2e6   : > { %v421_v62 = vpop.permute.xlu1 %420  ;;  %v417_v63 = vpop.permute.xlu0 %416 }
 0x2e7   : > { %v446_v3 = vmul.f32 %v421_v62, %v641_v8  ;;  %v447_v7 = vmul.f32 %v421_v62, %v643_v9  ;;  %v444_v10 = vmul.f32 %v417_v63, %v629_v2  ;;  %v445_v11 = vmul.f32 %v417_v63, %v633_v4 }
 0x2e9   : > { %458 = vst [vmem:[%s177_s27 + $0x10] sm:$0xff] %v446_v3  ;;  %459 = vst [vmem:[%s177_s27 + $0x18] sm:$0xff] %v447_v7 }
 0x2ea   : > { %456 = vst [vmem:[%s177_s27] sm:$0xff] %v444_v10  ;;  %457 = vst [vmem:[%s177_s27 + $0x8] sm:$0xff] %v445_v11  ;;  %v428_v16 = vpop.permute.xlu1 %427  ;;  %v439_v17 = vpop.permute.xlu0 %438 }
 0x2eb   : > { %v448_v18 = vmul.f32 %v428_v16, %v625_v0  ;;  %v449_v19 = vmul.f32 %v428_v16, %v627_v1  ;;  %v452_v20 = vmul.f32 %v439_v17, %v653_v14  ;;  %v453_v8 = vmul.f32 %v439_v17, %v655_v15 }
 0x2ed   : > { %460 = vst [vmem:[%s177_s27 + $0x20] sm:$0xff] %v448_v18  ;;  %461 = vst [vmem:[%s177_s27 + $0x28] sm:$0xff] %v449_v19 }
 0x2ee   : > { %464 = vst [vmem:[%s177_s27 + $0x40] sm:$0xff] %v452_v20  ;;  %465 = vst [vmem:[%s177_s27 + $0x48] sm:$0xff] %v453_v8  ;;  %v432_v2 = vpop.permute.xlu1 %431 }
 0x2ef   : > { %v450_v4 = vmul.f32 %v432_v2, %v635_v5  ;;  %v451_v9 = vmul.f32 %v432_v2, %v637_v6 }
 0x2f1   : > { %462 = vst [vmem:[%s177_s27 + $0x30] sm:$0xff] %v450_v4  ;;  %463 = vst [vmem:[%s177_s27 + $0x38] sm:$0xff] %v451_v9 }
 0x2f2   : > { %v443_v21 = vpop.permute.xlu1 %442 }
 0x2f3   : > { %v454_v0 = vmul.f32 %v443_v21, %v649_v12  ;;  %v455_v1 = vmul.f32 %v443_v21, %v651_v13 }
 0x2f5   : > { %466 = vst [vmem:[%s177_s27 + $0x50] sm:$0xff] %v454_v0  ;;  %467 = vst [vmem:[%s177_s27 + $0x58] sm:$0xff] %v455_v1 }
 0x2f6 PF: > { %s13_s12 = sadd.s32 1, %s584_s12  }
 0x2f7   : > { %p10_p4 = scmp.ge.s32.totalorder %s13_s12, 4  }
 0x2f9   :  { %12 = sbr.rel (!%p10_p4) target bundleno = 1 (0x1), region = 62 }

</bundles_post_ra>
